<compile_context>
chip_gen: v7x
topology: tpu7x:2x2x1
jax: 0.10.0
libtpu: 0.0.40
codegen_flags: <defaults>
</compile_context>

<pallas_src>
import jax
import jax.numpy as jnp
from jax.experimental import pallas as pl
from jax.experimental.pallas import tpu as pltpu


def _round_up(n, m):
    return ((n + m - 1) // m) * m


def timenet_kernel(x_ref, w1_ref, b1_ref, w2_ref, b2_ref, o_ref):
    # Fused 2-layer MLP for one batch tile. Weights/biases are full blocks with
    # constant index_maps, so they are DMA'd once and stay resident in VMEM.
    x = x_ref[...]                               # (TB, 8)   f32
    w1 = w1_ref[...]                             # (8, 64)   f32
    b1 = b1_ref[...]                             # (1, 64)   f32
    w2 = w2_ref[...]                             # (64, FC)  f32 or bf16
    b2 = b2_ref[...]                             # (1, FC)   f32

    h = jnp.dot(x, w1, preferred_element_type=jnp.float32) + b1      # MXU
    h = jnp.maximum(h, 0.0)                                          # VPU relu
    out = jnp.dot(h.astype(w2.dtype), w2,
                  preferred_element_type=jnp.float32) + b2           # MXU
    o_ref[...] = out.astype(o_ref.dtype)


def timenet_forward(x, w1, b1, w2, b2, *, block_batch=512, fc2_dtype=None,
                    out_dtype=None, vmem_budget_bytes=24 * 1024 * 1024):
    """y = relu(x @ w1 + b1) @ w2 + b2, batch-tiled Pallas kernel."""
    batch, in_feat = x.shape
    hidden = w1.shape[1]
    fc_dim = w2.shape[1]
    out_dtype = x.dtype if out_dtype is None else out_dtype
    if fc2_dtype is not None:
        w2 = w2.astype(fc2_dtype)          # e.g. bf16: 2-4x MXU rate, half bytes

    # Biases as (1, N) rows so they broadcast against (TB, N) tiles.
    b1 = b1.reshape(1, hidden)
    b2 = b2.reshape(1, fc_dim)

    # --- choose batch tile --------------------------------------------------
    # Double-buffered per-step streaming footprint ~= 2*TB*(8 + fc_dim)*bytes.
    out_bytes = jnp.dtype(out_dtype).itemsize
    per_row = 2 * (in_feat * x.dtype.itemsize + fc_dim * out_bytes)
    tb = max(8, min(int(block_batch), vmem_budget_bytes // max(per_row, 1)))
    tb = (tb // 8) * 8                       # sublane-aligned
    tb = min(tb, _round_up(batch, 8))        # never bigger than (padded) batch

    # Pad batch so every tile is full (unmasked-store fast path, (8,128) rule).
    padded = _round_up(batch, tb)
    if padded != batch:
        x = jnp.pad(x, ((0, padded - batch), (0, 0)))
    grid = (padded // tb,)

    flops = 2 * padded * (in_feat * hidden + hidden * fc_dim)
    bytes_accessed = (
        padded * in_feat * x.dtype.itemsize
        + w1.size * w1.dtype.itemsize + b1.size * b1.dtype.itemsize
        + w2.size * w2.dtype.itemsize + b2.size * b2.dtype.itemsize
        + padded * fc_dim * out_bytes)

    out = pl.pallas_call(
        timenet_kernel,
        out_shape=jax.ShapeDtypeStruct((padded, fc_dim), out_dtype),
        grid_spec=pltpu.PrefetchScalarGridSpec(
            num_scalar_prefetch=0,
            grid=grid,
            in_specs=[
                pl.BlockSpec((tb, in_feat), lambda i: (i, 0)),   # streamed
                pl.BlockSpec(w1.shape, lambda i: (0, 0)),        # resident
                pl.BlockSpec(b1.shape, lambda i: (0, 0)),        # resident
                pl.BlockSpec(w2.shape, lambda i: (0, 0)),        # resident
                pl.BlockSpec(b2.shape, lambda i: (0, 0)),        # resident
            ],
            out_specs=pl.BlockSpec((tb, fc_dim), lambda i: (i, 0)),
        ),
        compiler_params=pltpu.CompilerParams(
            dimension_semantics=("parallel",),   # batch tiles are independent
        ),
        cost_estimate=pl.CostEstimate(
            flops=flops, transcendentals=0, bytes_accessed=bytes_accessed),
    )(x, w1, b1, w2, b2)

    return out[:batch] if padded != batch else out


def init_params(key, fc_dim=512):
    # Deterministic synthetic init (PyTorch-style uniform fan_in bounds).
    k1, k2, k3, k4 = jax.random.split(key, 4)
    bound1 = 1.0 / jnp.sqrt(8.0)
    bound2 = 1.0 / jnp.sqrt(64.0)
    w1 = jax.random.uniform(k1, (8, 64), jnp.float32, -bound1, bound1)
    b1 = jax.random.uniform(k2, (1, 64), jnp.float32, -bound1, bound1)
    w2 = jax.random.uniform(k3, (64, fc_dim), jnp.float32, -bound2, bound2)
    b2 = jax.random.uniform(k4, (1, fc_dim), jnp.float32, -bound2, bound2)
    return w1, b1, w2, b2


if __name__ == "__main__":
    key = jax.random.PRNGKey(0)
    kx, kp = jax.random.split(key)

    batch, fc_dim = 40, 512
    x = jax.random.normal(kx, (batch, 8), jnp.float32)
    w1, b1, w2, b2 = init_params(kp, fc_dim=fc_dim)

    # f32 path: small block_batch forces a multi-tile grid with a ragged last
    # tile (exercises padding + output slice). Semantics match the PyTorch ref.
    out = timenet_forward(x, w1, b1, w2, b2, block_batch=32)
    out = jax.block_until_ready(out)
    ref = jnp.maximum(x @ w1 + b1, 0.0) @ w2 + b2
    assert out.shape == (batch, fc_dim)
    assert jnp.allclose(out, ref, atol=1e-4, rtol=1e-4)

    # Optional bf16 fc2 path (halves resident w2 bytes, faster MXU); compared
    # against a reference that applies the same bf16 quantization.
    out_bf = timenet_forward(x, w1, b1, w2, b2, block_batch=32,
                             fc2_dtype=jnp.bfloat16)
    out_bf = jax.block_until_ready(out_bf)
    h_bf = jnp.maximum(x @ w1 + b1, 0.0).astype(jnp.bfloat16)
    ref_bf = jnp.dot(h_bf, w2.astype(jnp.bfloat16),
                     preferred_element_type=jnp.float32) + b2
    assert jnp.allclose(out_bf, ref_bf, atol=1e-2, rtol=1e-2)

    print("KERNEL_OK")
</pallas_src>

<mosaic_0001>
module attributes {stable_mosaic.version = 11 : i64} {
  func.func @timenet_kernel(%arg0: i32, %arg1: memref<32x8xf32, #tpu.memory_space<vmem>>, %arg2: memref<8x64xf32, #tpu.memory_space<vmem>>, %arg3: memref<1x64xf32, #tpu.memory_space<vmem>>, %arg4: memref<64x512xf32, #tpu.memory_space<vmem>>, %arg5: memref<1x512xf32, #tpu.memory_space<vmem>>, %arg6: memref<32x512xf32, #tpu.memory_space<vmem>>) attributes {dimension_semantics = [#tpu.dimension_semantics<parallel>], iteration_bounds = array<i64: 2>, scalar_prefetch = 0 : i64, scratch_operands = 0 : i64, tpu.core_type = #tpu.core_type<tc>, window_params = [{transform_indices = @transform_0, window_bounds = array<i64: 32, 8>}, {pipeline_mode = #tpu.pipeline_mode<synchronous>, transform_indices = @transform_1, window_bounds = array<i64: 8, 64>}, {pipeline_mode = #tpu.pipeline_mode<synchronous>, transform_indices = @transform_2, window_bounds = array<i64: 1, 64>}, {pipeline_mode = #tpu.pipeline_mode<synchronous>, transform_indices = @transform_3, window_bounds = array<i64: 64, 512>}, {pipeline_mode = #tpu.pipeline_mode<synchronous>, transform_indices = @transform_4, window_bounds = array<i64: 1, 512>}, {transform_indices = @transform_5, window_bounds = array<i64: 32, 512>}]} {
    %c0 = arith.constant 0 : index
    %c0_0 = arith.constant 0 : index
    %0 = vector.load %arg1[%c0, %c0_0] : memref<32x8xf32, #tpu.memory_space<vmem>>, vector<32x8xf32>
    %c0_1 = arith.constant 0 : index
    %c0_2 = arith.constant 0 : index
    %1 = vector.load %arg2[%c0_1, %c0_2] : memref<8x64xf32, #tpu.memory_space<vmem>>, vector<8x64xf32>
    %c0_3 = arith.constant 0 : index
    %c0_4 = arith.constant 0 : index
    %2 = vector.load %arg3[%c0_3, %c0_4] : memref<1x64xf32, #tpu.memory_space<vmem>>, vector<1x64xf32>
    %c0_5 = arith.constant 0 : index
    %c0_6 = arith.constant 0 : index
    %3 = vector.load %arg4[%c0_5, %c0_6] : memref<64x512xf32, #tpu.memory_space<vmem>>, vector<64x512xf32>
    %c0_7 = arith.constant 0 : index
    %c0_8 = arith.constant 0 : index
    %4 = vector.load %arg5[%c0_7, %c0_8] : memref<1x512xf32, #tpu.memory_space<vmem>>, vector<1x512xf32>
    %cst = arith.constant dense<0.000000e+00> : vector<32x64xf32>
    %5 = tpu.matmul %0, %1, %cst {dimension_numbers = #tpu.dot_dimension_numbers<[1], [0], [0], [1], [0, 0, 1, 1], [], []>} : vector<32x8xf32>, vector<8x64xf32>, vector<32x64xf32> -> vector<32x64xf32>
    %6 = vector.broadcast %2 : vector<1x64xf32> to vector<32x64xf32>
    %7 = arith.addf %5, %6 : vector<32x64xf32>
    %cst_9 = arith.constant 0.000000e+00 : f32
    %8 = vector.broadcast %cst_9 : f32 to vector<32x64xf32>
    %9 = arith.maximumf %7, %8 : vector<32x64xf32>
    %cst_10 = arith.constant dense<0.000000e+00> : vector<32x512xf32>
    %10 = tpu.matmul %9, %3, %cst_10 {dimension_numbers = #tpu.dot_dimension_numbers<[1], [0], [0], [1], [0, 0, 1, 1], [], []>} : vector<32x64xf32>, vector<64x512xf32>, vector<32x512xf32> -> vector<32x512xf32>
    %11 = vector.broadcast %4 : vector<1x512xf32> to vector<32x512xf32>
    %12 = arith.addf %10, %11 : vector<32x512xf32>
    %c0_11 = arith.constant 0 : index
    %c0_12 = arith.constant 0 : index
    %13 = vector.load %arg6[%c0_11, %c0_12] : memref<32x512xf32, #tpu.memory_space<vmem>>, vector<32x512xf32>
    tpu.vector_store %arg6[%c0_11, %c0_12], %12 {strides = array<i32>} : memref<32x512xf32, #tpu.memory_space<vmem>>, vector<32x512xf32>,
    return
  }
  func.func @transform_0(%arg0: i32) -> (i32, i32) {
    %c0_i32 = arith.constant 0 : i32
    %c0_i32_0 = arith.constant 0 : i32
    return %arg0, %c0_i32 : i32, i32
  }
  func.func @transform_1(%arg0: i32) -> (i32, i32) {
    %c0_i32 = arith.constant 0 : i32
    %c0_i32_0 = arith.constant 0 : i32
    %c0_i32_1 = arith.constant 0 : i32
    return %c0_i32, %c0_i32_0 : i32, i32
  }
  func.func @transform_2(%arg0: i32) -> (i32, i32) {
    %c0_i32 = arith.constant 0 : i32
    %c0_i32_0 = arith.constant 0 : i32
    %c0_i32_1 = arith.constant 0 : i32
    return %c0_i32, %c0_i32_0 : i32, i32
  }
  func.func @transform_3(%arg0: i32) -> (i32, i32) {
    %c0_i32 = arith.constant 0 : i32
    %c0_i32_0 = arith.constant 0 : i32
    %c0_i32_1 = arith.constant 0 : i32
    return %c0_i32, %c0_i32_0 : i32, i32
  }
  func.func @transform_4(%arg0: i32) -> (i32, i32) {
    %c0_i32 = arith.constant 0 : i32
    %c0_i32_0 = arith.constant 0 : i32
    %c0_i32_1 = arith.constant 0 : i32
    return %c0_i32, %c0_i32_0 : i32, i32
  }
  func.func @transform_5(%arg0: i32) -> (i32, i32) {
    %c0_i32 = arith.constant 0 : i32
    %c0_i32_0 = arith.constant 0 : i32
    return %arg0, %c0_i32 : i32, i32
  }
}

</mosaic_0001>

<bundles_post_ra>
// kernel: tpu_custom_call.1
= control target key start
LH: loop header
LB: loop body
LE: loop exit
PB: predicated region body
PF: predicated region fallthrough
CT: control target
= control target key end

     0   :  { %10 = vsyncpa [#allocation3], 0  ;;  %s1149_s0 = inlined_call_operand.vmem [shape: f32[64,8], index: 0, kind: input, shape index: {}]   ;;  %s1150_s1 = inlined_call_operand.vmem [shape: f32[8,64], index: 1, kind: input, shape index: {}]   ;;  %s1151_s2 = inlined_call_operand.vmem [shape: f32[1,64], index: 2, kind: input, shape index: {}]   ;;  %s1152_s3 = inlined_call_operand.hbm [shape: f32[64,512], index: 3, kind: input, shape index: {}]   ;;  %s1153_s4 = inlined_call_operand.vmem [shape: f32[1,512], index: 4, kind: input, shape index: {}]   ;;  %s1154_s5 = inlined_call_operand.hbm [shape: f32[64,512], index: 5, kind: output, shape index: {}]  }
   0x1   :  { %11 = vsyncpa [#allocation4], 0 }
   0x2   :  { %13 = vsyncpa [#allocation4 + $0x1], 0  ;;  %s968_s18 = smov 0   ;;  %s970_s19 = smov 0  }
   0x3   :  { %s972_s20 = smov 0   ;;  %s974_s21 = smov 0  }
   0x4 LB: > { %s989_s22 = sadd.s32 4294967295, %s929_s21   ;;  %s705_s23 = sadd.s32 4294967294, %s929_s21   ;;  %s929_s21 = sphi %s974_s21, %s1170_s21   ;;  %s925_s20 = sphi %s972_s20, %s1169_s20   ;;  %s921_s19 = sphi %s970_s19, %s1168_s19   ;;  %s917_s18 = sphi %s968_s18, %s1167_s18  }
   0x5   : > { %s993_s24 = sadd.s32 1, %s929_s21   ;;  %s136_s25 = sadd.s32 1, %s925_s20 }
   0x6   : > { %s133_s26 = ssub.s32 %s929_s21, %s993_s24  ;;  %p146_p0 = scmp.ne.s32.totalorder %s925_s20, %s921_s19 }
   0x7   : > { %p134_p1 = scmp.eq.s32.totalorder %s133_s26, 0  ;;  %p147_p2 = scmp.eq.s32.totalorder %s989_s22, 1 }
   0x8   : > { %p152_p3 = scmp.ne.s32.totalorder %s921_s19, %s917_s18  ;;  %p153_p4 = scmp.eq.s32.totalorder %s705_s23, 1 }
   0x9   : > { %s1004_s27 = scalar_select %p134_p1, %s925_s20, %s136_s25  }
   0xa   : > { %p1006_p5 = por %p147_p2, %p146_p0  ;;  %p1010_p6 = por %p153_p4, %p152_p3 }
   0xb   : > { %p706_p7 = scmp.ge.s32.totalorder %s929_s21, 1  ;;  %p160_p8 = scmp.lt.s32.totalorder %s929_s21, 3 }
   0xc   : > { %s1158_s28 = scalar_select %p1006_p5, 1, 0 }
   0xd   : > { %s1159_s29 = scalar_select %p1010_p6, 1, 0 }
   0xe   : > { %p1155_p9 = scmp.eq.s32.totalorder %s989_s22, 0  ;;  %p1017_p10 = pnand %p706_p7, %p160_p8 }
   0xf   : > { %s931_s6 = smov [#allocation2]   ;;  %s835_s11 = scalar_lea.hbm %s1152_s3, 4096 }
  0x10   : > { %s1160_s30 = scalar_select %p1017_p10, 1, 0 }
  0x11   : > { %s178_s7 = sshll.u32 %s931_s6, 4  ;;  %p786_p11 = pneg %p1017_p10  ;;  %s179_s7 = int_to_ptr.vmem [resolvable:$true] %s178_s7 }
  0x12   : > { %p836_p13 = scmp.ne.s32.totalorder %s1152_s3, %s835_s11  ;;  %p842_p3 = scmp.lt.u32.totalorder %s835_s11, %s1152_s3 }
  0x13   : > { %p1025_p12 = pnand %p1155_p9, %p786_p11 }
  0x15   : > { %p837_p0 = pneg %p1025_p12 }
  0x17   : > { %p838_p1 = pnand %p837_p0, %p836_p13 }
  0x19   : > { %p839_p2 = pneg %p838_p1 }
  0x1b   : > { %p844_p4 = pnand %p842_p3, %p839_p2 }
  0x1d   : > { %847 = shalt.err (!%p844_p4)
}
  0x1e   : > { %s848_s16 = scalar_lea.vmem %s179_s7, 4096  ;;  %p856_p9 = scmp.lt.s32.totalorder %s179_s7, %s179_s7 }
  0x1f   : > { %p849_p7 = scmp.ne.s32.totalorder %s179_s7, %s848_s16  ;;  %p857_p6 = scmp.lt.s32.totalorder %s848_s16, %s848_s16 }
  0x21   : > { %p851_p8 = pnand %p849_p7, %p837_p0  ;;  %p858_p5 = por %p857_p6, %p856_p9 }
  0x23   : > { %p852_p11 = pneg %p851_p8 }
  0x25   : > { %p859_p10 = pnand %p858_p5, %p852_p11 }
  0x27   : > { %862 = shalt.err (!%p859_p10)
}
  0x28   : > { %s932_s17 = smov 512   ;;  %s933_s23 = smov 32  }
  0x29   : > { %789 = dma.hbm_to_vmem [thread:$0]  (!%p1025_p12), %s1152_s3, 4096, %s179_s7, [#allocation3], %s932_s17, %s932_s17, %s933_s23  }
  0x2a   : > { %p1162_p13 = scmp.ne.s32.totalorder %s1160_s30, 0 }
  0x2b   : > { %p1163_p1 = scmp.eq.s32.totalorder (!%p1162_p13), %s989_s22, 0 }
  0x2c   : > { %206 = sbr.rel (%p1162_p13) target bundleno = 519 (0x207), region = 40 }
  0x33   : > { %908 = dma.done.wait (%p1163_p1), [#allocation3], 4096   ;;  %p1164_p0 = pmov %p1163_p1 }
  0x34   : > { %s712_s6 = sshll.u32 %s989_s22, 2  ;;  %vm286_vm0 = vcmask 64512   ;;  %v245_v0 = vld [vmem:[%s1150_s1] sm:$0xff]  ;;  %v248_v4 = vld [vmem:[#allocation2 + $0x8] sm:$0xff]  ;;  %v250_v7 = vld [vmem:[#allocation2 + $0x18] sm:$0xff]  ;;  %v934_v53 = vmov 0.0  }
  0x35   : > { %910 = vsyncadd (%p1164_p0), [#allocation3], 4294963200  ;;  %p235_p5 = scmp.lt.s32.totalorder %s712_s6, 7  ;;  %740 = vmatprep.subr.mxu0 %v245_v0  ;;  %v252_v6 = vld [vmem:[#allocation2 + $0x28] sm:$0xff]  ;;  %v254_v8 = vld [vmem:[#allocation2 + $0x38] sm:$0xff]  ;;  %486 = vmatprep.mubr.f32.mxu1 %v934_v53  ;;  %vm409_vm1 = vcmask 523264  }
  0x36   : > { %741 = vmatpush3.msra.mxu0 %v245_v0  ;;  %v748_v9 = vpack.c.bf16 %v252_v6, %v248_v4  ;;  %v764_v10 = vpack.c.bf16 %v254_v8, %v250_v7  ;;  %v247_v11 = vld [vmem:[#allocation2] sm:$0xff]  ;;  %v249_v13 = vld [vmem:[#allocation2 + $0x10] sm:$0xff]  ;;  %v256_v16 = vld [vmem:[#allocation2 + $0x48] sm:$0xff]  ;;  %s231_s14 = sand.u32 1, %s921_s19   ;;  %s734_s25 = sshll.u32 %s989_s22, 11 }
  0x37   : > { %s1172_s6 = smov (!%p235_p5, %s712_s6), 7  ;;  %v251_v12 = vld [vmem:[#allocation2 + $0x20] sm:$0xff]  ;;  %v253_v15 = vld [vmem:[#allocation2 + $0x30] sm:$0xff]  ;;  %v260_v17 = vld [vmem:[#allocation2 + $0x68] sm:$0xff]  ;;  %s711_s17 = sshll.u32 %s231_s14, 7 }
  0x38   : > { %s713_s9 = sshll.u32 %s1172_s6, 3  ;;  %v750_v14 = vpack.c.bf16 %v251_v12, %v247_v11  ;;  %749 = vmatprep.subr.bf16.mxu1 %v748_v9  ;;  %765 = vmatprep.subr.bf16.mxu0 %v764_v10  ;;  %v766_v18 = vpack.c.bf16 %v253_v15, %v249_v13  ;;  %v752_v19 = vpack.c.bf16 %v260_v17, %v256_v16  ;;  %v258_v20 = vld [vmem:[#allocation2 + $0x58] sm:$0xff]  ;;  %v255_v22 = vld [vmem:[#allocation2 + $0x40] sm:$0xff]  ;;  %v257_v25 = vld [vmem:[#allocation2 + $0x50] sm:$0xff]  ;;  %s1079_s23 = scalar_lea.vmem [#allocation5], %s711_s17 }
  0x39   : > { %s238_s11 = scalar_lea.vmem %s1149_s0, %s713_s9  ;;  %v262_v21 = vld [vmem:[#allocation2 + $0x78] sm:$0xff]  ;;  %v259_v24 = vld [vmem:[#allocation2 + $0x60] sm:$0xff]  ;;  %v261_v26 = vld [vmem:[#allocation2 + $0x70] sm:$0xff]  ;;  %s631_s26 = sshll.u32 %s1079_s23, 4  ;;  %s1100_s26 = int_to_ptr.vmem [resolvable:$true] %s631_s26 }
  0x3a   : > { %v241_v1 = vld [vmem:[%s238_s11] sm:$0xff]  ;;  %v242_v2 = vld [vmem:[%s238_s11 + $0x8] sm:$0xff]  ;;  %v243_v3 = vld [vmem:[%s238_s11 + $0x10] sm:$0xff]  ;;  %751 = vmatpush1.bf16.msra.mxu1 %v750_v14  ;;  %v768_v23 = vpack.c.bf16 %v262_v21, %v258_v20  ;;  %v754_v27 = vpack.c.bf16 %v259_v24, %v255_v22  ;;  %v770_v31 = vpack.c.bf16 %v261_v26, %v257_v25  ;;  %s1098_s22 = scalar_lea.hbm %s1154_s5, %s734_s25  ;;  %s1108_s8 = scalar_lea.sflag [#allocation4], %s231_s14 }
  0x3b   : > { %742 = vmatprep.mubr.msk.f32.mxu0 %vm286_vm0, %v241_v1  ;;  %v244_v5 = vld [vmem:[%s238_s11 + $0x18] sm:$0xff]  ;;  %753 = vmatprep.subr.bf16.mxu1 %v752_v19  ;;  %v264_v28 = vld [vmem:[#allocation2 + $0x88] sm:$0xff]  ;;  %v263_v34 = vld [vmem:[#allocation2 + $0x80] sm:$0xff]  ;;  %s863_s10 = scalar_lea.vmem %s1100_s26, 2048  ;;  %p1165_p9 = scmp.ne.s32.totalorder %s1158_s28, 0 }
  0x3c   : > { %743 = vmatmul.mubr.msk.f32.vlgmr.msra.gmra.mrb[0].mxu0 %vm286_vm0, %v242_v2  ;;  %v268_v29 = vld [vmem:[#allocation2 + $0xa8] sm:$0xff]  ;;  %v266_v30 = vld [vmem:[#allocation2 + $0x98] sm:$0xff]  ;;  %v267_v35 = vld [vmem:[#allocation2 + $0xa0] sm:$0xff]  ;;  %p864_p6 = scmp.ne.s32.totalorder %s1100_s26, %s863_s10  ;;  %s935_s11 = smov [#allocation5]  }
  0x3d   : > { %745 = vmatprep.mubr.msk.f32.mxu0 %vm286_vm0, %v243_v3  ;;  %767 = vmatpush1.bf16.msra.mxu0 %v766_v18  ;;  %v756_v32 = vpack.c.bf16 %v268_v29, %v264_v28  ;;  %v270_v33 = vld [vmem:[#allocation2 + $0xb8] sm:$0xff]  ;;  %v265_v37 = vld [vmem:[#allocation2 + $0x90] sm:$0xff]  ;;  %v758_v39 = vpack.c.bf16 %v267_v35, %v263_v34  ;;  %v272_v41 = vld [vmem:[#allocation2 + $0xc8] sm:$0xff]  ;;  %v389_v3 = vlaneseq  ;;  %s867_s7 = sshll.u32 %s935_s11, 4  ;;  %s868_s7 = int_to_ptr.vmem [resolvable:$false] %s867_s7 }
  0x3e   : > { %769 = vmatprep.subr.bf16.mxu0 %v768_v23  ;;  %v772_v36 = vpack.c.bf16 %v270_v33, %v266_v30  ;;  %v269_v38 = vld [vmem:[#allocation2 + $0xb0] sm:$0xff]  ;;  %755 = vmatpush1.bf16.msra.mxu1 %v754_v27  ;;  %v276_v42 = vld [vmem:[#allocation2 + $0xe8] sm:$0xff]  ;;  %v274_v43 = vld [vmem:[#allocation2 + $0xd8] sm:$0xff]  ;;  %p865_p10 = pnand %p864_p6, %p1165_p9  ;;  %s869_s12 = scalar_lea.vmem %s868_s7, 4096 }
  0x3f   : > { %757 = vmatprep.subr.bf16.mxu1 %v756_v32  ;;  %v774_v40 = vpack.c.bf16 %v269_v38, %v265_v37  ;;  %v760_v44 = vpack.c.bf16 %v276_v42, %v272_v41  ;;  %v278_v45 = vld [vmem:[#allocation2 + $0xf8] sm:$0xff]  ;;  %v271_v46 = vld [vmem:[#allocation2 + $0xc0] sm:$0xff]  ;;  %v273_v49 = vld [vmem:[#allocation2 + $0xd0] sm:$0xff]  ;;  %v390_v4 = vshrl.u32 %v389_v3, 7  ;;  %p870_p2 = scmp.lt.s32.totalorder %s1100_s26, %s868_s7  ;;  %p871_p3 = scmp.lt.s32.totalorder %s869_s12, %s863_s10 }
  0x40   : > { %746 = vmatmul.mubr.msk.f32.gmra.mrb[2].mxu0 %vm286_vm0, %v244_v5  ;;  %v776_v47 = vpack.c.bf16 %v278_v45, %v274_v43  ;;  %v275_v48 = vld [vmem:[#allocation2 + $0xe0] sm:$0xff]  ;;  %v277_v50 = vld [vmem:[#allocation2 + $0xf0] sm:$0xff]  ;;  %p866_p12 = pneg %p865_p10 }
  0x41   : > { %771 = vmatpush1.bf16.msra.mxu0 %v770_v31  ;;  %v762_v51 = vpack.c.bf16 %v275_v48, %v271_v46  ;;  %v778_v52 = vpack.c.bf16 %v277_v50, %v273_v49  ;;  %575 = vmatprep.mubr.f32.mxu0 %v934_v53  ;;  %v714_v54 = vld [vmem:[%s1151_s2] ss:$0 sm:$0xff]  ;;  %v391_v5 = vsub.s32 0, %v390_v4  ;;  %v399_v6 = vsub.s32 2, %v390_v4  ;;  %p872_p4 = por %p871_p3, %p870_p2 }
  0x42   : > { %773 = vmatprep.subr.bf16.mxu0 %v772_v36  ;;  %759 = vmatpush1.bf16.msra.mxu1 %v758_v39  ;;  %v279_v7 = vld [vmem:[%s1153_s4] sm:$0xf]  ;;  %v395_v8 = vsub.s32 1, %v390_v4  ;;  %v403_v9 = vsub.s32 3, %v390_v4 }
  0x43   : > { %761 = vmatprep.subr.bf16.mxu1 %v760_v44  ;;  %v392_v10 = vrot.slane %v279_v7, %v391_v5  ;;  %v400_v11 = vrot.slane %v279_v7, %v399_v6  ;;  %p873_p7 = pnand %p872_p4, %p866_p12 }
  0x44   : > { %v396_v12 = vrot.slane %v279_v7, %v395_v8  ;;  %v404_v13 = vrot.slane %v279_v7, %v403_v9 }
  0x45   : > { %775 = vmatpush1.bf16.msra.mxu0 %v774_v40 }
  0x46   : > { %777 = vmatprep.subr.bf16.mxu0 %v776_v47  ;;  %763 = vmatpush1.bf16.msra.mxu1 %v762_v51 }
  0x49   : > { %779 = vmatpush1.bf16.msra.mxu0 %v778_v52 }
 0x10f   : > { %v744_v55 = vpop.f32.mrb[0].mxu0 }
 0x110   : > { %v365_v56 = vpop.f32.mrb[1].mxu0  ;;  %v371_v58 = vadd.f32 %v744_v55, %v714_v54 }
 0x111   : > { %v366_v57 = vadd.f32 %v714_v54, %v365_v56 }
 0x112   : > { %v385_v63 = vmax.f32 %v371_v58, 0.0 }
 0x113   : > { %v384_v59 = vmax.f32 %v366_v57, 0.0  ;;  %v747_v60 = vpop.f32.mrb[2].mxu0 }
 0x114   : > { %v375_v61 = vpop.f32.mrb[3].mxu0  ;;  %v381_v1 = vadd.f32 %v747_v60, %v714_v54 }
 0x115   : > { %719 = vmatmul.mubr.msk.f32.vlgmr.msra.gmra.mrb[0].mxu1 %vm409_vm1, %v384_v59  ;;  %723 = vmatmul.mubr.msk.f32.vlgmr.msra.gmra.mrb[4].mxu0 %vm409_vm1, %v384_v59  ;;  %v376_v62 = vadd.f32 %v714_v54, %v375_v61 }
 0x116   : > { %492 = vmatprep.mubr.f32.mxu1 %v934_v53  ;;  %581 = vmatprep.mubr.f32.mxu0 %v934_v53  ;;  %v387_v2 = vmax.f32 %v381_v1, 0.0 }
 0x117   : > { %v386_v0 = vmax.f32 %v376_v62, 0.0 }
 0x119   : > { %720 = vmatmul.mubr.msk.f32.gmra.mrb[2].mxu1 %vm409_vm1, %v385_v63  ;;  %724 = vmatmul.mubr.msk.f32.gmra.mrb[6].mxu0 %vm409_vm1, %v385_v63 }
 0x11a   : > { %498 = vmatprep.mubr.f32.mxu1 %v934_v53  ;;  %587 = vmatprep.mubr.f32.mxu0 %v934_v53 }
 0x11d   : > { %721 = vmatmul.mubr.msk.f32.gmra.mrb[4].mxu1 %vm409_vm1, %v386_v0  ;;  %725 = vmatmul.mubr.msk.f32.gmra.mrb[8].mxu0 %vm409_vm1, %v386_v0 }
 0x11e   : > { %504 = vmatprep.mubr.f32.mxu1 %v934_v53  ;;  %593 = vmatprep.mubr.f32.mxu0 %v934_v53 }
 0x121   : > { %722 = vmatmul.mubr.msk.f32.gmra.mrb[6].mxu1 %vm409_vm1, %v387_v2  ;;  %726 = vmatmul.mubr.msk.f32.gmra.mrb[10].mxu0 %vm409_vm1, %v387_v2 }
 0x1e8   : > { %v488_v14 = vpop.f32.mrb[0].mxu1  ;;  %v577_v15 = vpop.f32.mrb[4].mxu0 }
 0x1e9   : > { %v489_v16 = vadd.f32 %v488_v14, %v392_v10  ;;  %v578_v17 = vadd.f32 %v577_v15, %v400_v11  ;;  %v490_v18 = vpop.f32.mrb[1].mxu1  ;;  %v579_v19 = vpop.f32.mrb[5].mxu0 }
 0x1ea   : > { %v491_v20 = vadd.f32 %v490_v18, %v396_v12  ;;  %v580_v21 = vadd.f32 %v579_v19, %v404_v13 }
 0x1eb   : > { %600 = vst [vmem:[%s1079_s23] sm:$0xff] %v489_v16  ;;  %602 = vst [vmem:[%s1079_s23 + $0x10] sm:$0xff] %v578_v17 }
 0x1ec   : > { %601 = vst [vmem:[%s1079_s23 + $0x8] sm:$0xff] %v491_v20  ;;  %603 = vst [vmem:[%s1079_s23 + $0x18] sm:$0xff] %v580_v21  ;;  %v494_v22 = vpop.f32.mrb[2].mxu1  ;;  %v583_v23 = vpop.f32.mrb[6].mxu0 }
 0x1ed   : > { %v495_v24 = vadd.f32 %v494_v22, %v392_v10  ;;  %v584_v25 = vadd.f32 %v583_v23, %v400_v11  ;;  %v496_v26 = vpop.f32.mrb[3].mxu1  ;;  %v585_v27 = vpop.f32.mrb[7].mxu0 }
 0x1ee   : > { %v497_v28 = vadd.f32 %v496_v26, %v396_v12  ;;  %v586_v29 = vadd.f32 %v585_v27, %v404_v13 }
 0x1ef   : > { %604 = vst [vmem:[%s1079_s23 + $0x20] sm:$0xff] %v495_v24  ;;  %606 = vst [vmem:[%s1079_s23 + $0x30] sm:$0xff] %v584_v25 }
 0x1f0   : > { %605 = vst [vmem:[%s1079_s23 + $0x28] sm:$0xff] %v497_v28  ;;  %607 = vst [vmem:[%s1079_s23 + $0x38] sm:$0xff] %v586_v29  ;;  %v500_v30 = vpop.f32.mrb[4].mxu1  ;;  %v589_v31 = vpop.f32.mrb[8].mxu0 }
 0x1f1   : > { %v501_v32 = vadd.f32 %v500_v30, %v392_v10  ;;  %v590_v33 = vadd.f32 %v589_v31, %v400_v11  ;;  %v502_v34 = vpop.f32.mrb[5].mxu1  ;;  %v591_v35 = vpop.f32.mrb[9].mxu0 }
 0x1f2   : > { %v503_v36 = vadd.f32 %v502_v34, %v396_v12  ;;  %v592_v37 = vadd.f32 %v591_v35, %v404_v13 }
 0x1f3   : > { %608 = vst [vmem:[%s1079_s23 + $0x40] sm:$0xff] %v501_v32  ;;  %610 = vst [vmem:[%s1079_s23 + $0x50] sm:$0xff] %v590_v33 }
 0x1f4   : > { %609 = vst [vmem:[%s1079_s23 + $0x48] sm:$0xff] %v503_v36  ;;  %611 = vst [vmem:[%s1079_s23 + $0x58] sm:$0xff] %v592_v37  ;;  %v506_v38 = vpop.f32.mrb[6].mxu1  ;;  %v595_v39 = vpop.f32.mrb[10].mxu0 }
 0x1f5   : > { %v507_v40 = vadd.f32 %v506_v38, %v392_v10  ;;  %v596_v41 = vadd.f32 %v595_v39, %v400_v11  ;;  %v508_v42 = vpop.f32.mrb[7].mxu1  ;;  %v597_v43 = vpop.f32.mrb[11].mxu0 }
 0x1f6   : > { %v509_v44 = vadd.f32 %v508_v42, %v396_v12  ;;  %v598_v45 = vadd.f32 %v597_v43, %v404_v13 }
 0x1f7   : > { %612 = vst [vmem:[%s1079_s23 + $0x60] sm:$0xff] %v507_v40  ;;  %614 = vst [vmem:[%s1079_s23 + $0x70] sm:$0xff] %v596_v41 }
 0x1f8   : > { %613 = vst [vmem:[%s1079_s23 + $0x68] sm:$0xff] %v509_v44  ;;  %615 = vst [vmem:[%s1079_s23 + $0x78] sm:$0xff] %v598_v45 }
 0x1f9   : > { %876 = shalt.err (!%p873_p7)
}
 0x1fa   : > { %s877_s30 = scalar_lea.hbm %s1098_s22, 2048  ;;  %s881_s15 = scalar_lea.hbm %s1154_s5, 4096 }
 0x1fb   : > { %p878_p8 = scmp.ne.s32.totalorder %s1098_s22, %s877_s30  ;;  %p882_p1 = scmp.lt.u32.totalorder %s1098_s22, %s1154_s5 }
 0x1fc   : > { %p883_p0 = scmp.lt.u32.totalorder %s881_s15, %s877_s30  ;;  %p885_p6 = scmp.lt.u32.totalorder %s877_s30, %s1098_s22 }
 0x1fd   : > { %p879_p11 = pnand %p878_p8, %p1165_p9 }
 0x1fe   : > { %p884_p5 = por %p883_p0, %p882_p1 }
 0x1ff   : > { %p880_p13 = pneg %p879_p11 }
 0x200   : > { %p886_p10 = por %p885_p6, %p884_p5 }
 0x202   : > { %p887_p12 = pnand %p886_p10, %p880_p13 }
 0x204   : > { %890 = shalt.err (!%p887_p12)
}
 0x205   : > { %s936_s23 = smov 512   ;;  %s937_s25 = smov 32  }
 0x206   : > { %784 = dma.vmem_to_hbm [thread:$0]  (%p1165_p9), %s1100_s26, 2048, %s1098_s22, %s1108_s8, %s936_s23, %s936_s23, %s937_s25  }
 0x207 PF: > { %p796_p2 = scmp.ge.s32.totalorder %s929_s21, 2  ;;  %s646_s6 = sand.u32 1, %s917_s18  }
 0x208   : > { %p1166_p3 = scmp.ne.s32.totalorder %s1159_s29, 0  ;;  %s647_s9 = scalar_lea.sflag [#allocation4], %s646_s6 }
 0x20a   : > { %p791_p4 = pnand %p796_p2, %p1166_p3 }
 0x20c   : > { %912 = dma.done.wait (!%p791_p4), %s647_s9, 2048  }
 0x20d   : > { %914 = vsyncadd (!%p791_p4), %s647_s9, 4294965248  ;;  %p16_p7 = scmp.ge.s32.totalorder %s993_s24, 4   ;;  %s1167_s18 = smov %s921_s19 }
 0x20e   : > { %s1168_s19 = smov %s925_s20  ;;  %s1169_s20 = smov %s1004_s27 }
 0x20f   : > { %s1170_s21 = smov %s993_s24  ;;  %18 = sbr.rel (!%p16_p7) target bundleno = 4 (0x4), region = 80 }
 0x216   :  { %652 = vsyncpa [#allocation3], 1 }
 0x217   :  { %654 = vsyncpa [#allocation3 + $0x1], 1 }
 0x218   :  { %655 = vsyncpa [#allocation4], 1 }
 0x219   :  { %657 = vsyncpa [#allocation4 + $0x1], 1 }

</bundles_post_ra>
